<compile_context>
chip_gen: v5e
topology: v5e:2x2
jax: 0.10.0
libtpu: 0.0.40
codegen_flags: <defaults>
</compile_context>

<pallas_src>
import functools

import jax
import jax.numpy as jnp
from jax import lax
from jax.experimental import pallas as pl
from jax.experimental.pallas import tpu as pltpu


# --------------------------- hardware-aware sizing ---------------------------

def _cores_per_device():
    """TensorCores addressed by one JAX device.  On megacore chips a grid axis
    marked 'parallel' is sharded across both cores; on single-TC chips the grid
    is a serial loop and splitting only adds per-step overhead."""
    try:
        kind = jax.devices()[0].device_kind.lower()
    except Exception:
        return 1
    if any(tag in kind for tag in ("7x", "v7", "v5p", "v4")):
        return 2
    return 1


def _vmem_capacity_bytes():
    try:
        cap = getattr(pltpu.get_tpu_info(), "vmem_capacity_bytes", None)
        if cap:
            return int(cap)
    except Exception:
        pass
    return 64 << 20  # v7x-safe fallback


def _step_vmem_bytes(nb, t_in, t_out, c_in_pad, c, c_final, conv_k, kw):
    """Rough per-grid-step VMEM footprint: double-buffered I/O blocks + live f32 temps."""
    f32 = 4
    l_in, l_out = nb * t_in, nb * t_out
    b = 2 * c_in_pad * l_in * f32                            # input block (x2 buffers)
    b += 2 * c_final * l_out * f32                           # output block (x2 buffers)
    b += 2 * conv_k * c_in_pad * l_in * f32                  # front-conv taps + im2col
    b += (4 + (2 * kw if kw > 1 else 0)) * c * l_out * f32   # live activations
    return b


def _pick_batch_group(n, t_in, t_out, cores, budget_bytes, step_bytes_fn):
    """Batch elements folded into the lane axis per grid step.
    v5e/v6e (1 TC): as large as VMEM allows (ideally one step).
    v4/v5p/v7x (megacore): keep >= `cores` grid steps when the batch allows."""
    candidates = [d for d in range(1, n + 1) if n % d == 0 and
                  (d == n or ((d * t_in) % 128 == 0 and (d * t_out) % 128 == 0))]
    fitting = [d for d in candidates if step_bytes_fn(d) <= budget_bytes]
    pool, prefer_max = (fitting, True) if fitting else (candidates, False)
    if cores > 1:
        multi = [d for d in pool if (n // d) >= min(cores, n)]
        if multi:
            pool = multi
    return max(pool) if prefer_max else min(pool)


# --------------------------------- kernel ------------------------------------

def _tcw_encoder_kernel(*refs, nb, t_in, t_out, c, c_in_pad, conv_k, conv_stride,
                        conv_pad, folded_conv, kw, num_blocks, has_front_conv,
                        has_out_proj, eps):
    # refs = (x_ref, <params...>, o_ref); parameter refs are whole-array VMEM blocks.
    x_ref = refs[0]
    o_ref = refs[-1]
    params = refs[1:-1]

    idx = 0
    if has_front_conv:
        cw_ref, cb_ref, cg_ref, cbt_ref = params[idx:idx + 4]
        idx += 4
    block_refs = []
    for _ in range(num_blocks):
        block_refs.append(params[idx:idx + 10])
        idx += 10
    if has_out_proj:
        lw_ref, lb_ref = params[idx:idx + 2]
        idx += 2

    l_in = nb * t_in
    l_out = nb * t_out

    def ln_channels(y, g_ref, b_ref):
        # LayerNorm over the channel (sublane) axis.  Two-pass f32 statistics
        # (biased variance, eps inside rsqrt) matching torch.nn.LayerNorm.
        inv_c = 1.0 / y.shape[0]
        mean = jnp.sum(y, axis=0, keepdims=True) * inv_c
        yc = y - mean
        var = jnp.sum(yc * yc, axis=0, keepdims=True) * inv_c
        return yc * lax.rsqrt(var + eps) * g_ref[...] + b_ref[...]

    def make_shift(seg_len, total):
        # Static shift along the folded batch*time lane axis.  pltpu.roll runs on the
        # XLU slot; columns whose source crosses a batch-segment boundary (or the
        # array edge) are zeroed, matching PyTorch's zero padding.
        pos = lax.broadcasted_iota(jnp.int32, (1, total), 1) % seg_len

        def shift(v, off):
            if off == 0:
                return v
            rolled = pltpu.roll(v, shift=(-off) % total, axis=1)
            src = pos + off
            valid = jnp.logical_and(src >= 0, src < seg_len)
            return jnp.where(valid, rolled, 0.0)

        return shift

    x = x_ref[...]                                            # (c_in_pad, nb*t_in)

    # ---- Conv1dBlock: Conv1d(+bias) -> ReLU -> Dropout(p=0) -> LayerNorm(C) ----
    if has_front_conv:
        if folded_conv:
            # stride-1 "same" conv, fully folded over the batch-lane axis: one
            # sublane-stacked im2col (conv_k * c_in_pad rows) and a single MXU matmul.
            shift_in = make_shift(t_in, l_in)
            taps = [shift_in(x, k - conv_pad) for k in range(conv_k)]
            xim = taps[0] if conv_k == 1 else jnp.concatenate(taps, axis=0)
            h = jnp.dot(cw_ref[...], xim, preferred_element_type=jnp.float32)
        else:
            # TODO(synk): stride>1 / non-"same" front conv stays per-batch with a
            # strided lane slice; optimize (sublane-select subsample) if this config
            # is ever used -- the module defaults (stride=1, 2*pad == K-1) never hit it.
            cw = cw_ref[...]
            segs = []
            for b in range(nb):
                xb = lax.slice(x, (0, b * t_in), (c_in_pad, (b + 1) * t_in))
                if conv_pad > 0:
                    z = jnp.zeros((c_in_pad, conv_pad), x.dtype)
                    xb = jnp.concatenate([z, xb, z], axis=1)
                acc = None
                for k in range(conv_k):
                    limit = k + (t_out - 1) * conv_stride + 1
                    xk = lax.slice(xb, (0, k), (c_in_pad, limit), (1, conv_stride))
                    wk = lax.slice(cw, (0, k * c_in_pad), (c, (k + 1) * c_in_pad))
                    d = jnp.dot(wk, xk, preferred_element_type=jnp.float32)
                    acc = d if acc is None else acc + d
                segs.append(acc)
            h = segs[0] if nb == 1 else jnp.concatenate(segs, axis=1)
        h = jnp.maximum(h + cb_ref[...], 0.0)
        h = ln_channels(h, cg_ref, cbt_ref)
    else:
        h = x.astype(jnp.float32)                             # already C channels

    # ---- TDS blocks, all operating on the folded (C, nb*t_out) activation ----
    shift_out = make_shift(t_out, l_out) if kw > 1 else None
    for brefs in block_refs:
        (mw_ref, mb_ref, mg_ref, mbt_ref,
         w1_ref, b1_ref, w2_ref, b2_ref, fg_ref, fbt_ref) = brefs

        # TDSConv2dBlock: the (1, kw) Conv2d is folded (wrapper-side) into a single
        # (C, kw*C) matrix acting on a sublane-stacked im2col of the shifted taps.
        resid = h
        if kw == 1:
            y = jnp.dot(mw_ref[...], h, preferred_element_type=jnp.float32)
        else:
            pad2 = (kw - 1) // 2
            taps = [shift_out(h, k - pad2) for k in range(kw)]
            y = jnp.dot(mw_ref[...], jnp.concatenate(taps, axis=0),
                        preferred_element_type=jnp.float32)
        y = jnp.maximum(y + mb_ref[...], 0.0)
        h = ln_channels(y + resid, mg_ref, mbt_ref)

        # TDSFullyConnectedBlock: Linear -> ReLU -> Linear -> residual -> LN(C).
        resid = h
        y = jnp.dot(w1_ref[...], h, preferred_element_type=jnp.float32) + b1_ref[...]
        y = jnp.maximum(y, 0.0)
        y = jnp.dot(w2_ref[...], y, preferred_element_type=jnp.float32) + b2_ref[...]
        h = ln_channels(y + resid, fg_ref, fbt_ref)

    # ---- optional Linear head over channels ----
    if has_out_proj:
        h = jnp.dot(lw_ref[...], h, preferred_element_type=jnp.float32) + lb_ref[...]

    o_ref[...] = h.astype(o_ref.dtype)                        # one lane-dense store


# -------------------------------- wrapper ------------------------------------

def tcw_encoder_forward(x, params, *, channels, feature_width, in_conv_kernel_width,
                        in_conv_stride, in_conv_padding, kernel_width, eps=1e-5):
    """Forward pass of TcwEncoder.  x: (N, C_in, T) in NCT layout (PyTorch Conv1d)."""
    n, c_in, t = x.shape
    c = channels * feature_width
    width = feature_width
    kw = kernel_width
    assert kw % 2 == 1, "kernel_width must be odd."
    has_front_conv = in_conv_kernel_width > 0
    out_p = params.get('out')
    has_out_proj = out_p is not None

    if has_front_conv:
        conv_k = in_conv_kernel_width
        t_out = (t + 2 * in_conv_padding - conv_k) // in_conv_stride + 1
        c_in_pad = -(-c_in // 8) * 8          # sublane-align C_in for the im2col stack
    else:
        assert c_in == c, "in_channels must equal channels*feature_width without front conv"
        conv_k = 0
        t_out = t
        c_in_pad = c_in
    folded_conv = has_front_conv and in_conv_stride == 1 and t_out == t

    # --- parameter plumbing (tiny tensors; no passes over the activations) ---
    flat = []
    if has_front_conv:
        w = params['conv']['w']                               # (C, C_in, K)
        w = jnp.pad(w, ((0, 0), (0, c_in_pad - c_in), (0, 0)))
        cw_flat = jnp.transpose(w, (0, 2, 1)).reshape(c, conv_k * c_in_pad)
        flat += [
            cw_flat,                                          # (C, K*C_in_pad) im2col weight
            params['conv']['b'].reshape(c, 1),
            params['conv']['g'].reshape(c, 1),
            params['conv']['beta'].reshape(c, 1),
        ]
    for blk in params['blocks']:
        w2d = blk['c2d_w'][:, :, 0, :]                        # (ch, ch, kw)
        eye = jnp.eye(width, dtype=w2d.dtype)
        m = jnp.einsum('oik,wv->kowiv', w2d, eye).reshape(kw, c, c)   # kron(W_k, I_width)
        mflat = jnp.transpose(m, (1, 0, 2)).reshape(c, kw * c)        # im2col weight
        flat += [
            mflat,
            jnp.repeat(blk['c2d_b'], width).reshape(c, 1),
            blk['c2d_g'].reshape(c, 1),
            blk['c2d_beta'].reshape(c, 1),
            blk['w1'], blk['b1'].reshape(c, 1),
            blk['w2'], blk['b2'].reshape(c, 1),
            blk['fc_g'].reshape(c, 1),
            blk['fc_beta'].reshape(c, 1),
        ]
    if has_out_proj:
        c_final = out_p['w'].shape[0]
        flat += [out_p['w'], out_p['b'].reshape(c_final, 1)]
    else:
        c_final = c

    # --- batch-group selection (how many batches get folded into lanes per step) ---
    cores = _cores_per_device()
    vmem_cap = _vmem_capacity_bytes()
    step_fn = lambda d: _step_vmem_bytes(d, t, t_out, c_in_pad, c, c_final, conv_k, kw)
    nb = _pick_batch_group(n, t, t_out, cores, vmem_cap // 4, step_fn)
    grid = (n // nb,)
    vmem_limit = int(min(int(0.9 * vmem_cap), max(32 << 20, 2 * step_fn(nb))))

    # --- fold the batch into the lane (time) axis: (N, C_in, T) -> (C_in_pad, N*T) ---
    x_t = jnp.transpose(x, (1, 0, 2)).reshape(c_in, n * t)
    if c_in_pad > c_in:
        x_t = jnp.pad(x_t, ((0, c_in_pad - c_in), (0, 0)))

    kernel = functools.partial(
        _tcw_encoder_kernel,
        nb=nb, t_in=t, t_out=t_out, c=c, c_in_pad=c_in_pad, conv_k=conv_k,
        conv_stride=in_conv_stride, conv_pad=in_conv_padding, folded_conv=folded_conv,
        kw=kw, num_blocks=len(params['blocks']), has_front_conv=has_front_conv,
        has_out_proj=has_out_proj, eps=eps)

    in_specs = [pl.BlockSpec((c_in_pad, nb * t), lambda i: (0, i))]
    for p in flat:
        in_specs.append(pl.BlockSpec(p.shape, lambda i: (0, 0)))

    out_flat = pl.pallas_call(
        kernel,
        out_shape=jax.ShapeDtypeStruct((c_final, n * t_out), x.dtype),
        grid=grid,
        in_specs=in_specs,
        out_specs=pl.BlockSpec((c_final, nb * t_out), lambda i: (0, i)),
        compiler_params=pltpu.CompilerParams(
            dimension_semantics=("parallel",),
            vmem_limit_bytes=vmem_limit),
    )(x_t, *flat)

    # unfold the batch axis back to NCT (single tiny XLA transpose)
    return jnp.transpose(out_flat.reshape(c_final, n, t_out), (1, 0, 2))


# ----------------------------- pure-JAX reference -----------------------------

def _ln_over_channels_nct(y, g, b, eps):
    yt = jnp.swapaxes(y, -1, -2)
    mean = jnp.mean(yt, axis=-1, keepdims=True)
    var = jnp.mean((yt - mean) ** 2, axis=-1, keepdims=True)
    yt = (yt - mean) * lax.rsqrt(var + eps) * g + b
    return jnp.swapaxes(yt, -1, -2)


def _reference(x, params, *, channels, feature_width, in_conv_kernel_width,
               in_conv_stride, in_conv_padding, kernel_width, eps=1e-5):
    """Pure-JAX mirror of TcwEncoder.forward (verification only)."""
    y = x
    if in_conv_kernel_width > 0:
        y = lax.conv_general_dilated(
            y, params['conv']['w'], (in_conv_stride,),
            [(in_conv_padding, in_conv_padding)],
            dimension_numbers=("NCH", "OIH", "NCH"))
        y = jnp.maximum(y + params['conv']['b'][None, :, None], 0.0)
        y = _ln_over_channels_nct(y, params['conv']['g'], params['conv']['beta'], eps)
    pad2 = (kernel_width - 1) // 2
    for blk in params['blocks']:
        b_, c_, t_ = y.shape
        z = y.reshape(b_, channels, feature_width, t_)
        z = lax.conv_general_dilated(
            z, blk['c2d_w'], (1, 1), [(0, 0), (pad2, pad2)],
            dimension_numbers=("NCHW", "OIHW", "NCHW"))
        z = jnp.maximum(z + blk['c2d_b'][None, :, None, None], 0.0)
        z = z.reshape(b_, c_, -1)
        t2 = z.shape[-1]
        z = z + y[..., -t2:]
        y = _ln_over_channels_nct(z, blk['c2d_g'], blk['c2d_beta'], eps)

        inp = y
        yt = jnp.swapaxes(inp, -1, -2)
        h = jnp.maximum(yt @ blk['w1'].T + blk['b1'], 0.0)
        h = h @ blk['w2'].T + blk['b2']
        y = _ln_over_channels_nct(jnp.swapaxes(h, -1, -2) + inp,
                                  blk['fc_g'], blk['fc_beta'], eps)
    if params.get('out') is not None:
        yt = jnp.swapaxes(y, -1, -2) @ params['out']['w'].T + params['out']['b']
        y = jnp.swapaxes(yt, -1, -2)
    return y


# ----------------------------------- test ------------------------------------

if __name__ == "__main__":
    def run_case(name, *, n_batch, t_len, in_channels, in_conv_kernel_width,
                 in_conv_stride, in_conv_padding, num_blocks, channels,
                 feature_width, kernel_width, out_channels, seed):
        c = channels * feature_width
        f32 = jnp.float32
        ks = iter(jax.random.split(jax.random.PRNGKey(seed), 64))
        x = jax.random.normal(next(ks), (n_batch, in_channels, t_len), f32)
        params = {'blocks': [], 'out': None}
        if in_conv_kernel_width > 0:
            params['conv'] = {
                'w': 0.2 * jax.random.normal(next(ks), (c, in_channels, in_conv_kernel_width), f32),
                'b': 0.1 * jax.random.normal(next(ks), (c,), f32),
                'g': 1.0 + 0.1 * jax.random.normal(next(ks), (c,), f32),
                'beta': 0.1 * jax.random.normal(next(ks), (c,), f32),
            }
        for _ in range(num_blocks):
            params['blocks'].append({
                'c2d_w': 0.2 * jax.random.normal(next(ks), (channels, channels, 1, kernel_width), f32),
                'c2d_b': 0.1 * jax.random.normal(next(ks), (channels,), f32),
                'c2d_g': 1.0 + 0.1 * jax.random.normal(next(ks), (c,), f32),
                'c2d_beta': 0.1 * jax.random.normal(next(ks), (c,), f32),
                'w1': 0.2 * jax.random.normal(next(ks), (c, c), f32),
                'b1': 0.1 * jax.random.normal(next(ks), (c,), f32),
                'w2': 0.2 * jax.random.normal(next(ks), (c, c), f32),
                'b2': 0.1 * jax.random.normal(next(ks), (c,), f32),
                'fc_g': 1.0 + 0.1 * jax.random.normal(next(ks), (c,), f32),
                'fc_beta': 0.1 * jax.random.normal(next(ks), (c,), f32),
            })
        if out_channels is not None:
            params['out'] = {
                'w': 0.2 * jax.random.normal(next(ks), (out_channels, c), f32),
                'b': 0.1 * jax.random.normal(next(ks), (out_channels,), f32),
            }
        kwargs = dict(channels=channels, feature_width=feature_width,
                      in_conv_kernel_width=in_conv_kernel_width,
                      in_conv_stride=in_conv_stride,
                      in_conv_padding=in_conv_padding,
                      kernel_width=kernel_width)
        out = jax.block_until_ready(tcw_encoder_forward(x, params, **kwargs))
        ref = _reference(x, params, **kwargs)
        assert out.shape == ref.shape, (name, out.shape, ref.shape)
        max_err = float(jnp.max(jnp.abs(out - ref)))
        assert jnp.allclose(out, ref, atol=2e-4, rtol=2e-4), (name, max_err)

    # 1) Default TcwEncoder config: front Conv1dBlock (K=5, same), one TDS block, kw=1.
    run_case("default", n_batch=2, t_len=128, in_channels=6, in_conv_kernel_width=5,
             in_conv_stride=1, in_conv_padding=2, num_blocks=1, channels=8,
             feature_width=2, kernel_width=1, out_channels=None, seed=0)

    # 2) No front conv, kernel_width=3 (exercises the folded TDS tap shifts),
    #    two TDS blocks and a linear head.
    run_case("kw3_head", n_batch=2, t_len=128, in_channels=16, in_conv_kernel_width=0,
             in_conv_stride=1, in_conv_padding=0, num_blocks=2, channels=8,
             feature_width=2, kernel_width=3, out_channels=12, seed=1)

    print("KERNEL_OK")
</pallas_src>

<mosaic_0001>
module attributes {stable_mosaic.version = 11 : i64} {
  func.func @_tcw_encoder_kernel(%arg0: i32, %arg1: memref<8x256xf32, #tpu.memory_space<vmem>>, %arg2: memref<16x40xf32, #tpu.memory_space<vmem>>, %arg3: memref<16x1xf32, #tpu.memory_space<vmem>>, %arg4: memref<16x1xf32, #tpu.memory_space<vmem>>, %arg5: memref<16x1xf32, #tpu.memory_space<vmem>>, %arg6: memref<16x16xf32, #tpu.memory_space<vmem>>, %arg7: memref<16x1xf32, #tpu.memory_space<vmem>>, %arg8: memref<16x1xf32, #tpu.memory_space<vmem>>, %arg9: memref<16x1xf32, #tpu.memory_space<vmem>>, %arg10: memref<16x16xf32, #tpu.memory_space<vmem>>, %arg11: memref<16x1xf32, #tpu.memory_space<vmem>>, %arg12: memref<16x16xf32, #tpu.memory_space<vmem>>, %arg13: memref<16x1xf32, #tpu.memory_space<vmem>>, %arg14: memref<16x1xf32, #tpu.memory_space<vmem>>, %arg15: memref<16x1xf32, #tpu.memory_space<vmem>>, %arg16: memref<16x256xf32, #tpu.memory_space<vmem>>) attributes {dimension_semantics = [#tpu.dimension_semantics<parallel>], iteration_bounds = array<i64: 1>, scalar_prefetch = 0 : i64, scratch_operands = 0 : i64, tpu.core_type = #tpu.core_type<tc>, window_params = [{transform_indices = @transform_0, window_bounds = array<i64: 8, 256>}, {pipeline_mode = #tpu.pipeline_mode<synchronous>, transform_indices = @transform_1, window_bounds = array<i64: 16, 40>}, {pipeline_mode = #tpu.pipeline_mode<synchronous>, transform_indices = @transform_2, window_bounds = array<i64: 16, 1>}, {pipeline_mode = #tpu.pipeline_mode<synchronous>, transform_indices = @transform_3, window_bounds = array<i64: 16, 1>}, {pipeline_mode = #tpu.pipeline_mode<synchronous>, transform_indices = @transform_4, window_bounds = array<i64: 16, 1>}, {pipeline_mode = #tpu.pipeline_mode<synchronous>, transform_indices = @transform_5, window_bounds = array<i64: 16, 16>}, {pipeline_mode = #tpu.pipeline_mode<synchronous>, transform_indices = @transform_6, window_bounds = array<i64: 16, 1>}, {pipeline_mode = #tpu.pipeline_mode<synchronous>, transform_indices = @transform_7, window_bounds = array<i64: 16, 1>}, {pipeline_mode = #tpu.pipeline_mode<synchronous>, transform_indices = @transform_8, window_bounds = array<i64: 16, 1>}, {pipeline_mode = #tpu.pipeline_mode<synchronous>, transform_indices = @transform_9, window_bounds = array<i64: 16, 16>}, {pipeline_mode = #tpu.pipeline_mode<synchronous>, transform_indices = @transform_10, window_bounds = array<i64: 16, 1>}, {pipeline_mode = #tpu.pipeline_mode<synchronous>, transform_indices = @transform_11, window_bounds = array<i64: 16, 16>}, {pipeline_mode = #tpu.pipeline_mode<synchronous>, transform_indices = @transform_12, window_bounds = array<i64: 16, 1>}, {pipeline_mode = #tpu.pipeline_mode<synchronous>, transform_indices = @transform_13, window_bounds = array<i64: 16, 1>}, {pipeline_mode = #tpu.pipeline_mode<synchronous>, transform_indices = @transform_14, window_bounds = array<i64: 16, 1>}, {transform_indices = @transform_15, window_bounds = array<i64: 16, 256>}]} {
    %c0 = arith.constant 0 : index
    %c0_0 = arith.constant 0 : index
    %0 = vector.load %arg1[%c0, %c0_0] : memref<8x256xf32, #tpu.memory_space<vmem>>, vector<8x256xf32>
    %1 = tpu.iota {dimensions = array<i32: 1>} : vector<1x256xi32>
    %c128_i32 = arith.constant 128 : i32
    %c0_i32 = arith.constant 0 : i32
    %2 = arith.cmpi eq, %c128_i32, %c0_i32 : i32
    %c1_i32 = arith.constant 1 : i32
    %3 = arith.select %2, %c1_i32, %c128_i32 : i32
    %4 = vector.broadcast %3 : i32 to vector<1x256xi32>
    %5 = arith.remsi %1, %4 : vector<1x256xi32>
    %c0_i32_1 = arith.constant 0 : i32
    %6 = vector.broadcast %c0_i32_1 : i32 to vector<1x256xi32>
    %7 = arith.cmpi ne, %5, %6 : vector<1x256xi32>
    %c0_i32_2 = arith.constant 0 : i32
    %8 = vector.broadcast %c0_i32_2 : i32 to vector<1x256xi32>
    %9 = arith.cmpi slt, %5, %8 : vector<1x256xi32>
    %c0_i32_3 = arith.constant 0 : i32
    %10 = arith.cmpi slt, %3, %c0_i32_3 : i32
    %11 = vector.broadcast %10 : i1 to vector<1x256xi1>
    %12 = vector.broadcast %11 : vector<1x256xi1> to vector<1x256xi1>
    %13 = arith.xori %9, %12 : vector<1x256xi1>
    %14 = arith.andi %13, %7 : vector<1x256xi1>
    %15 = vector.broadcast %3 : i32 to vector<1x256xi32>
    %16 = arith.addi %5, %15 : vector<1x256xi32>
    %17 = arith.select %14, %16, %5 : vector<1x256xi1>, vector<1x256xi32>
    %c2_i32 = arith.constant 2 : i32
    %18 = tpu.dynamic_rotate %0 by %c2_i32 dim 1 : vector<8x256xf32>, i32 -> vector<8x256xf32>
    %c-2_i32 = arith.constant -2 : i32
    %19 = vector.broadcast %c-2_i32 : i32 to vector<1x256xi32>
    %20 = arith.addi %17, %19 : vector<1x256xi32>
    %c0_i32_4 = arith.constant 0 : i32
    %21 = vector.broadcast %c0_i32_4 : i32 to vector<1x256xi32>
    %22 = arith.cmpi sge, %20, %21 : vector<1x256xi32>
    %c128_i32_5 = arith.constant 128 : i32
    %23 = vector.broadcast %c128_i32_5 : i32 to vector<1x256xi32>
    %24 = arith.cmpi slt, %20, %23 : vector<1x256xi32>
    %25 = arith.andi %22, %24 : vector<1x256xi1>
    %cst = arith.constant 0.000000e+00 : f32
    %26 = vector.shape_cast %25 : vector<1x256xi1> to vector<1x256xi1>
    %27 = vector.broadcast %26 : vector<1x256xi1> to vector<8x256xi1>
    %28 = vector.broadcast %cst : f32 to vector<8x256xf32>
    %29 = arith.select %27, %18, %28 : vector<8x256xi1>, vector<8x256xf32>
    %c1_i32_6 = arith.constant 1 : i32
    %30 = tpu.dynamic_rotate %0 by %c1_i32_6 dim 1 : vector<8x256xf32>, i32 -> vector<8x256xf32>
    %c-1_i32 = arith.constant -1 : i32
    %31 = vector.broadcast %c-1_i32 : i32 to vector<1x256xi32>
    %32 = arith.addi %17, %31 : vector<1x256xi32>
    %c0_i32_7 = arith.constant 0 : i32
    %33 = vector.broadcast %c0_i32_7 : i32 to vector<1x256xi32>
    %34 = arith.cmpi sge, %32, %33 : vector<1x256xi32>
    %c128_i32_8 = arith.constant 128 : i32
    %35 = vector.broadcast %c128_i32_8 : i32 to vector<1x256xi32>
    %36 = arith.cmpi slt, %32, %35 : vector<1x256xi32>
    %37 = arith.andi %34, %36 : vector<1x256xi1>
    %cst_9 = arith.constant 0.000000e+00 : f32
    %38 = vector.shape_cast %37 : vector<1x256xi1> to vector<1x256xi1>
    %39 = vector.broadcast %38 : vector<1x256xi1> to vector<8x256xi1>
    %40 = vector.broadcast %cst_9 : f32 to vector<8x256xf32>
    %41 = arith.select %39, %30, %40 : vector<8x256xi1>, vector<8x256xf32>
    %c255_i32 = arith.constant 255 : i32
    %42 = tpu.dynamic_rotate %0 by %c255_i32 dim 1 : vector<8x256xf32>, i32 -> vector<8x256xf32>
    %c1_i32_10 = arith.constant 1 : i32
    %43 = vector.broadcast %c1_i32_10 : i32 to vector<1x256xi32>
    %44 = arith.addi %17, %43 : vector<1x256xi32>
    %c0_i32_11 = arith.constant 0 : i32
    %45 = vector.broadcast %c0_i32_11 : i32 to vector<1x256xi32>
    %46 = arith.cmpi sge, %44, %45 : vector<1x256xi32>
    %c128_i32_12 = arith.constant 128 : i32
    %47 = vector.broadcast %c128_i32_12 : i32 to vector<1x256xi32>
    %48 = arith.cmpi slt, %44, %47 : vector<1x256xi32>
    %49 = arith.andi %46, %48 : vector<1x256xi1>
    %cst_13 = arith.constant 0.000000e+00 : f32
    %50 = vector.shape_cast %49 : vector<1x256xi1> to vector<1x256xi1>
    %51 = vector.broadcast %50 : vector<1x256xi1> to vector<8x256xi1>
    %52 = vector.broadcast %cst_13 : f32 to vector<8x256xf32>
    %53 = arith.select %51, %42, %52 : vector<8x256xi1>, vector<8x256xf32>
    %c254_i32 = arith.constant 254 : i32
    %54 = tpu.dynamic_rotate %0 by %c254_i32 dim 1 : vector<8x256xf32>, i32 -> vector<8x256xf32>
    %c2_i32_14 = arith.constant 2 : i32
    %55 = vector.broadcast %c2_i32_14 : i32 to vector<1x256xi32>
    %56 = arith.addi %17, %55 : vector<1x256xi32>
    %c0_i32_15 = arith.constant 0 : i32
    %57 = vector.broadcast %c0_i32_15 : i32 to vector<1x256xi32>
    %58 = arith.cmpi sge, %56, %57 : vector<1x256xi32>
    %c128_i32_16 = arith.constant 128 : i32
    %59 = vector.broadcast %c128_i32_16 : i32 to vector<1x256xi32>
    %60 = arith.cmpi slt, %56, %59 : vector<1x256xi32>
    %61 = arith.andi %58, %60 : vector<1x256xi1>
    %cst_17 = arith.constant 0.000000e+00 : f32
    %62 = vector.shape_cast %61 : vector<1x256xi1> to vector<1x256xi1>
    %63 = vector.broadcast %62 : vector<1x256xi1> to vector<8x256xi1>
    %64 = vector.broadcast %cst_17 : f32 to vector<8x256xf32>
    %65 = arith.select %63, %54, %64 : vector<8x256xi1>, vector<8x256xf32>
    %66 = tpu.concatenate %29, %41, %0, %53, %65 in 0 : vector<8x256xf32>, vector<8x256xf32>, vector<8x256xf32>, vector<8x256xf32>, vector<8x256xf32> -> vector<40x256xf32>
    %c0_18 = arith.constant 0 : index
    %c0_19 = arith.constant 0 : index
    %67 = vector.load %arg2[%c0_18, %c0_19] : memref<16x40xf32, #tpu.memory_space<vmem>>, vector<16x40xf32>
    %cst_20 = arith.constant dense<0.000000e+00> : vector<16x256xf32>
    %68 = tpu.matmul %67, %66, %cst_20 {dimension_numbers = #tpu.dot_dimension_numbers<[1], [0], [0], [1], [0, 0, 1, 1], [], []>} : vector<16x40xf32>, vector<40x256xf32>, vector<16x256xf32> -> vector<16x256xf32>
    %c0_21 = arith.constant 0 : index
    %c0_22 = arith.constant 0 : index
    %69 = vector.load %arg3[%c0_21, %c0_22] : memref<16x1xf32, #tpu.memory_space<vmem>>, vector<16x1xf32>
    %70 = vector.broadcast %69 : vector<16x1xf32> to vector<16x256xf32>
    %71 = arith.addf %68, %70 : vector<16x256xf32>
    %cst_23 = arith.constant 0.000000e+00 : f32
    %72 = vector.broadcast %cst_23 : f32 to vector<16x256xf32>
    %73 = arith.maximumf %71, %72 : vector<16x256xf32>
    %cst_24 = arith.constant dense<0.000000e+00> : vector<256xf32>
    %74 = vector.multi_reduction <add>, %73, %cst_24 [0] : vector<16x256xf32> to vector<256xf32>
    %75 = vector.shape_cast %74 : vector<256xf32> to vector<1x256xf32>
    %cst_25 = arith.constant 6.250000e-02 : f32
    %76 = vector.broadcast %cst_25 : f32 to vector<1x256xf32>
    %77 = arith.mulf %75, %76 : vector<1x256xf32>
    %78 = vector.broadcast %77 : vector<1x256xf32> to vector<16x256xf32>
    %79 = arith.subf %73, %78 : vector<16x256xf32>
    %80 = arith.mulf %79, %79 : vector<16x256xf32>
    %cst_26 = arith.constant dense<0.000000e+00> : vector<256xf32>
    %81 = vector.multi_reduction <add>, %80, %cst_26 [0] : vector<16x256xf32> to vector<256xf32>
    %82 = vector.shape_cast %81 : vector<256xf32> to vector<1x256xf32>
    %cst_27 = arith.constant 6.250000e-02 : f32
    %83 = vector.broadcast %cst_27 : f32 to vector<1x256xf32>
    %84 = arith.mulf %82, %83 : vector<1x256xf32>
    %cst_28 = arith.constant 9.99999974E-6 : f32
    %85 = vector.broadcast %cst_28 : f32 to vector<1x256xf32>
    %86 = arith.addf %84, %85 : vector<1x256xf32>
    %87 = math.rsqrt %86 : vector<1x256xf32>
    %88 = vector.broadcast %87 : vector<1x256xf32> to vector<16x256xf32>
    %89 = arith.mulf %79, %88 : vector<16x256xf32>
    %c0_29 = arith.constant 0 : index
    %c0_30 = arith.constant 0 : index
    %90 = vector.load %arg4[%c0_29, %c0_30] : memref<16x1xf32, #tpu.memory_space<vmem>>, vector<16x1xf32>
    %91 = vector.broadcast %90 : vector<16x1xf32> to vector<16x256xf32>
    %92 = arith.mulf %89, %91 : vector<16x256xf32>
    %c0_31 = arith.constant 0 : index
    %c0_32 = arith.constant 0 : index
    %93 = vector.load %arg5[%c0_31, %c0_32] : memref<16x1xf32, #tpu.memory_space<vmem>>, vector<16x1xf32>
    %94 = vector.broadcast %93 : vector<16x1xf32> to vector<16x256xf32>
    %95 = arith.addf %92, %94 : vector<16x256xf32>
    %c0_33 = arith.constant 0 : index
    %c0_34 = arith.constant 0 : index
    %96 = vector.load %arg6[%c0_33, %c0_34] : memref<16x16xf32, #tpu.memory_space<vmem>>, vector<16x16xf32>
    %cst_35 = arith.constant dense<0.000000e+00> : vector<16x256xf32>
    %97 = tpu.matmul %96, %95, %cst_35 {dimension_numbers = #tpu.dot_dimension_numbers<[1], [0], [0], [1], [0, 0, 1, 1], [], []>} : vector<16x16xf32>, vector<16x256xf32>, vector<16x256xf32> -> vector<16x256xf32>
    %c0_36 = arith.constant 0 : index
    %c0_37 = arith.constant 0 : index
    %98 = vector.load %arg7[%c0_36, %c0_37] : memref<16x1xf32, #tpu.memory_space<vmem>>, vector<16x1xf32>
    %99 = vector.broadcast %98 : vector<16x1xf32> to vector<16x256xf32>
    %100 = arith.addf %97, %99 : vector<16x256xf32>
    %cst_38 = arith.constant 0.000000e+00 : f32
    %101 = vector.broadcast %cst_38 : f32 to vector<16x256xf32>
    %102 = arith.maximumf %100, %101 : vector<16x256xf32>
    %103 = arith.addf %102, %95 : vector<16x256xf32>
    %cst_39 = arith.constant dense<0.000000e+00> : vector<256xf32>
    %104 = vector.multi_reduction <add>, %103, %cst_39 [0] : vector<16x256xf32> to vector<256xf32>
    %105 = vector.shape_cast %104 : vector<256xf32> to vector<1x256xf32>
    %cst_40 = arith.constant 6.250000e-02 : f32
    %106 = vector.broadcast %cst_40 : f32 to vector<1x256xf32>
    %107 = arith.mulf %105, %106 : vector<1x256xf32>
    %108 = vector.broadcast %107 : vector<1x256xf32> to vector<16x256xf32>
    %109 = arith.subf %103, %108 : vector<16x256xf32>
    %110 = arith.mulf %109, %109 : vector<16x256xf32>
    %cst_41 = arith.constant dense<0.000000e+00> : vector<256xf32>
    %111 = vector.multi_reduction <add>, %110, %cst_41 [0] : vector<16x256xf32> to vector<256xf32>
    %112 = vector.shape_cast %111 : vector<256xf32> to vector<1x256xf32>
    %cst_42 = arith.constant 6.250000e-02 : f32
    %113 = vector.broadcast %cst_42 : f32 to vector<1x256xf32>
    %114 = arith.mulf %112, %113 : vector<1x256xf32>
    %cst_43 = arith.constant 9.99999974E-6 : f32
    %115 = vector.broadcast %cst_43 : f32 to vector<1x256xf32>
    %116 = arith.addf %114, %115 : vector<1x256xf32>
    %117 = math.rsqrt %116 : vector<1x256xf32>
    %118 = vector.broadcast %117 : vector<1x256xf32> to vector<16x256xf32>
    %119 = arith.mulf %109, %118 : vector<16x256xf32>
    %c0_44 = arith.constant 0 : index
    %c0_45 = arith.constant 0 : index
    %120 = vector.load %arg8[%c0_44, %c0_45] : memref<16x1xf32, #tpu.memory_space<vmem>>, vector<16x1xf32>
    %121 = vector.broadcast %120 : vector<16x1xf32> to vector<16x256xf32>
    %122 = arith.mulf %119, %121 : vector<16x256xf32>
    %c0_46 = arith.constant 0 : index
    %c0_47 = arith.constant 0 : index
    %123 = vector.load %arg9[%c0_46, %c0_47] : memref<16x1xf32, #tpu.memory_space<vmem>>, vector<16x1xf32>
    %124 = vector.broadcast %123 : vector<16x1xf32> to vector<16x256xf32>
    %125 = arith.addf %122, %124 : vector<16x256xf32>
    %c0_48 = arith.constant 0 : index
    %c0_49 = arith.constant 0 : index
    %126 = vector.load %arg10[%c0_48, %c0_49] : memref<16x16xf32, #tpu.memory_space<vmem>>, vector<16x16xf32>
    %cst_50 = arith.constant dense<0.000000e+00> : vector<16x256xf32>
    %127 = tpu.matmul %126, %125, %cst_50 {dimension_numbers = #tpu.dot_dimension_numbers<[1], [0], [0], [1], [0, 0, 1, 1], [], []>} : vector<16x16xf32>, vector<16x256xf32>, vector<16x256xf32> -> vector<16x256xf32>
    %c0_51 = arith.constant 0 : index
    %c0_52 = arith.constant 0 : index
    %128 = vector.load %arg11[%c0_51, %c0_52] : memref<16x1xf32, #tpu.memory_space<vmem>>, vector<16x1xf32>
    %129 = vector.broadcast %128 : vector<16x1xf32> to vector<16x256xf32>
    %130 = arith.addf %127, %129 : vector<16x256xf32>
    %cst_53 = arith.constant 0.000000e+00 : f32
    %131 = vector.broadcast %cst_53 : f32 to vector<16x256xf32>
    %132 = arith.maximumf %130, %131 : vector<16x256xf32>
    %c0_54 = arith.constant 0 : index
    %c0_55 = arith.constant 0 : index
    %133 = vector.load %arg12[%c0_54, %c0_55] : memref<16x16xf32, #tpu.memory_space<vmem>>, vector<16x16xf32>
    %cst_56 = arith.constant dense<0.000000e+00> : vector<16x256xf32>
    %134 = tpu.matmul %133, %132, %cst_56 {dimension_numbers = #tpu.dot_dimension_numbers<[1], [0], [0], [1], [0, 0, 1, 1], [], []>} : vector<16x16xf32>, vector<16x256xf32>, vector<16x256xf32> -> vector<16x256xf32>
    %c0_57 = arith.constant 0 : index
    %c0_58 = arith.constant 0 : index
    %135 = vector.load %arg13[%c0_57, %c0_58] : memref<16x1xf32, #tpu.memory_space<vmem>>, vector<16x1xf32>
    %136 = vector.broadcast %135 : vector<16x1xf32> to vector<16x256xf32>
    %137 = arith.addf %134, %136 : vector<16x256xf32>
    %138 = arith.addf %137, %125 : vector<16x256xf32>
    %cst_59 = arith.constant dense<0.000000e+00> : vector<256xf32>
    %139 = vector.multi_reduction <add>, %138, %cst_59 [0] : vector<16x256xf32> to vector<256xf32>
    %140 = vector.shape_cast %139 : vector<256xf32> to vector<1x256xf32>
    %cst_60 = arith.constant 6.250000e-02 : f32
    %141 = vector.broadcast %cst_60 : f32 to vector<1x256xf32>
    %142 = arith.mulf %140, %141 : vector<1x256xf32>
    %143 = vector.broadcast %142 : vector<1x256xf32> to vector<16x256xf32>
    %144 = arith.subf %138, %143 : vector<16x256xf32>
    %145 = arith.mulf %144, %144 : vector<16x256xf32>
    %cst_61 = arith.constant dense<0.000000e+00> : vector<256xf32>
    %146 = vector.multi_reduction <add>, %145, %cst_61 [0] : vector<16x256xf32> to vector<256xf32>
    %147 = vector.shape_cast %146 : vector<256xf32> to vector<1x256xf32>
    %cst_62 = arith.constant 6.250000e-02 : f32
    %148 = vector.broadcast %cst_62 : f32 to vector<1x256xf32>
    %149 = arith.mulf %147, %148 : vector<1x256xf32>
    %cst_63 = arith.constant 9.99999974E-6 : f32
    %150 = vector.broadcast %cst_63 : f32 to vector<1x256xf32>
    %151 = arith.addf %149, %150 : vector<1x256xf32>
    %152 = math.rsqrt %151 : vector<1x256xf32>
    %153 = vector.broadcast %152 : vector<1x256xf32> to vector<16x256xf32>
    %154 = arith.mulf %144, %153 : vector<16x256xf32>
    %c0_64 = arith.constant 0 : index
    %c0_65 = arith.constant 0 : index
    %155 = vector.load %arg14[%c0_64, %c0_65] : memref<16x1xf32, #tpu.memory_space<vmem>>, vector<16x1xf32>
    %156 = vector.broadcast %155 : vector<16x1xf32> to vector<16x256xf32>
    %157 = arith.mulf %154, %156 : vector<16x256xf32>
    %c0_66 = arith.constant 0 : index
    %c0_67 = arith.constant 0 : index
    %158 = vector.load %arg15[%c0_66, %c0_67] : memref<16x1xf32, #tpu.memory_space<vmem>>, vector<16x1xf32>
    %159 = vector.broadcast %158 : vector<16x1xf32> to vector<16x256xf32>
    %160 = arith.addf %157, %159 : vector<16x256xf32>
    %c0_68 = arith.constant 0 : index
    %c0_69 = arith.constant 0 : index
    %161 = vector.load %arg16[%c0_68, %c0_69] : memref<16x256xf32, #tpu.memory_space<vmem>>, vector<16x256xf32>
    tpu.vector_store %arg16[%c0_68, %c0_69], %160 {strides = array<i32>} : memref<16x256xf32, #tpu.memory_space<vmem>>, vector<16x256xf32>,
    return
  }
  func.func @transform_0(%arg0: i32) -> (i32, i32) {
    %c0_i32 = arith.constant 0 : i32
    %c0_i32_0 = arith.constant 0 : i32
    return %c0_i32, %arg0 : i32, i32
  }
  func.func @transform_1(%arg0: i32) -> (i32, i32) {
    %c0_i32 = arith.constant 0 : i32
    %c0_i32_0 = arith.constant 0 : i32
    %c0_i32_1 = arith.constant 0 : i32
    return %c0_i32, %c0_i32_0 : i32, i32
  }
  func.func @transform_2(%arg0: i32) -> (i32, i32) {
    %c0_i32 = arith.constant 0 : i32
    %c0_i32_0 = arith.constant 0 : i32
    %c0_i32_1 = arith.constant 0 : i32
    return %c0_i32, %c0_i32_0 : i32, i32
  }
  func.func @transform_3(%arg0: i32) -> (i32, i32) {
    %c0_i32 = arith.constant 0 : i32
    %c0_i32_0 = arith.constant 0 : i32
    %c0_i32_1 = arith.constant 0 : i32
    return %c0_i32, %c0_i32_0 : i32, i32
  }
  func.func @transform_4(%arg0: i32) -> (i32, i32) {
    %c0_i32 = arith.constant 0 : i32
    %c0_i32_0 = arith.constant 0 : i32
    %c0_i32_1 = arith.constant 0 : i32
    return %c0_i32, %c0_i32_0 : i32, i32
  }
  func.func @transform_5(%arg0: i32) -> (i32, i32) {
    %c0_i32 = arith.constant 0 : i32
    %c0_i32_0 = arith.constant 0 : i32
    %c0_i32_1 = arith.constant 0 : i32
    return %c0_i32, %c0_i32_0 : i32, i32
  }
  func.func @transform_6(%arg0: i32) -> (i32, i32) {
    %c0_i32 = arith.constant 0 : i32
    %c0_i32_0 = arith.constant 0 : i32
    %c0_i32_1 = arith.constant 0 : i32
    return %c0_i32, %c0_i32_0 : i32, i32
  }
  func.func @transform_7(%arg0: i32) -> (i32, i32) {
    %c0_i32 = arith.constant 0 : i32
    %c0_i32_0 = arith.constant 0 : i32
    %c0_i32_1 = arith.constant 0 : i32
    return %c0_i32, %c0_i32_0 : i32, i32
  }
  func.func @transform_8(%arg0: i32) -> (i32, i32) {
    %c0_i32 = arith.constant 0 : i32
    %c0_i32_0 = arith.constant 0 : i32
    %c0_i32_1 = arith.constant 0 : i32
    return %c0_i32, %c0_i32_0 : i32, i32
  }
  func.func @transform_9(%arg0: i32) -> (i32, i32) {
    %c0_i32 = arith.constant 0 : i32
    %c0_i32_0 = arith.constant 0 : i32
    %c0_i32_1 = arith.constant 0 : i32
    return %c0_i32, %c0_i32_0 : i32, i32
  }
  func.func @transform_10(%arg0: i32) -> (i32, i32) {
    %c0_i32 = arith.constant 0 : i32
    %c0_i32_0 = arith.constant 0 : i32
    %c0_i32_1 = arith.constant 0 : i32
    return %c0_i32, %c0_i32_0 : i32, i32
  }
  func.func @transform_11(%arg0: i32) -> (i32, i32) {
    %c0_i32 = arith.constant 0 : i32
    %c0_i32_0 = arith.constant 0 : i32
    %c0_i32_1 = arith.constant 0 : i32
    return %c0_i32, %c0_i32_0 : i32, i32
  }
  func.func @transform_12(%arg0: i32) -> (i32, i32) {
    %c0_i32 = arith.constant 0 : i32
    %c0_i32_0 = arith.constant 0 : i32
    %c0_i32_1 = arith.constant 0 : i32
    return %c0_i32, %c0_i32_0 : i32, i32
  }
  func.func @transform_13(%arg0: i32) -> (i32, i32) {
    %c0_i32 = arith.constant 0 : i32
    %c0_i32_0 = arith.constant 0 : i32
    %c0_i32_1 = arith.constant 0 : i32
    return %c0_i32, %c0_i32_0 : i32, i32
  }
  func.func @transform_14(%arg0: i32) -> (i32, i32) {
    %c0_i32 = arith.constant 0 : i32
    %c0_i32_0 = arith.constant 0 : i32
    %c0_i32_1 = arith.constant 0 : i32
    return %c0_i32, %c0_i32_0 : i32, i32
  }
  func.func @transform_15(%arg0: i32) -> (i32, i32) {
    %c0_i32 = arith.constant 0 : i32
    %c0_i32_0 = arith.constant 0 : i32
    return %c0_i32, %arg0 : i32, i32
  }
}

</mosaic_0001>

<bundles_post_ra>
// kernel: tpu_custom_call.1
= control target key start
LH: loop header
LB: loop body
LE: loop exit
PB: predicated region body
PF: predicated region fallthrough
CT: control target
= control target key end

     0   :  { %s839_s20 = smov 127   ;;  %s840_s21 = smov 126   ;;  %s1057_s0 = inlined_call_operand.vmem [shape: f32[8,256], index: 0, kind: input, shape index: {}]   ;;  %s1058_s1 = inlined_call_operand.vmem [shape: f32[16,40], index: 1, kind: input, shape index: {}]   ;;  %s1059_s2 = inlined_call_operand.vmem [shape: f32[16,1], index: 2, kind: input, shape index: {}]   ;;  %s1060_s3 = inlined_call_operand.vmem [shape: f32[16,1], index: 3, kind: input, shape index: {}]   ;;  %s1061_s4 = inlined_call_operand.vmem [shape: f32[16,1], index: 4, kind: input, shape index: {}]   ;;  %s1062_s5 = inlined_call_operand.vmem [shape: f32[16,16], index: 5, kind: input, shape index: {}]   ;;  %s1063_s6 = inlined_call_operand.vmem [shape: f32[16,1], index: 6, kind: input, shape index: {}]   ;;  %s1064_s7 = inlined_call_operand.vmem [shape: f32[16,1], index: 7, kind: input, shape index: {}]   ;;  %s1065_s8 = inlined_call_operand.vmem [shape: f32[16,1], index: 8, kind: input, shape index: {}]   ;;  %s1066_s9 = inlined_call_operand.vmem [shape: f32[16,16], index: 9, kind: input, shape index: {}]   ;;  %s1067_s10 = inlined_call_operand.vmem [shape: f32[16,1], index: 10, kind: input, shape index: {}]   ;;  %s1068_s11 = inlined_call_operand.vmem [shape: f32[16,16], index: 11, kind: input, shape index: {}]   ;;  %s1069_s12 = inlined_call_operand.vmem [shape: f32[16,1], index: 12, kind: input, shape index: {}]   ;;  %s1070_s13 = inlined_call_operand.vmem [shape: f32[16,1], index: 13, kind: input, shape index: {}]   ;;  %s1071_s14 = inlined_call_operand.vmem [shape: f32[16,1], index: 14, kind: input, shape index: {}]   ;;  %s1072_s15 = inlined_call_operand.hbm [shape: f32[16,256], index: 15, kind: output, shape index: {}]  }
   0x1   :  { %v930_v0 = vld [vmem:[%s1057_s0] sm:$0xff] }
   0x2   :  { %122 = vrot.lane.b32.xlu1 %v930_v0, %s839_s20  ;;  %143 = vrot.lane.b32.xlu0 %v930_v0, %s840_s21 }
   0x3   :  { %20 = vsyncpa [#allocation3], 0  ;;  %s841_s22 = smov 1   ;;  %v842_v1 = vmov 0   ;;  %v938_v2 = vld [vmem:[%s1057_s0 + $0x8] sm:$0xff]  ;;  %s843_s25 = smov 2   ;;  %v53_v7 = vlaneseq }
   0x4   :  { %101 = vrot.lane.b32.xlu2 %v930_v0, %s841_s22  ;;  %799 = vset.pattern.permute.xlu0 %v842_v1  ;;  %v167_v3 = vld [vmem:[%s1059_s2 + $0x8] sm:$0xff]  ;;  %v335_v4 = vld [vmem:[%s1063_s6] sm:$0xff]  ;;  %vm178_vm12 = vcmask 326656   ;;  %s754_s19 = sshll.u32 %s1072_s15, 4  ;;  %s755_s19 = int_to_ptr.hbm [resolvable:$true] %s754_s19 }
   0x5   :  { %798 = vset.pattern.permute.xlu2 %v842_v1  ;;  %800 = vset.pattern.permute.xlu1 %v842_v1  ;;  %v166_v5 = vld [vmem:[%s1059_s2] sm:$0xff]  ;;  %v509_v9 = vld [vmem:[%s1067_s10 + $0x8] sm:$0xff]  ;;  %v963_v10 = vand.u32 127, %v53_v7 }
   0x6   :  { %v474_v6 = vld [vmem:[%s1064_s7] sm:$0xff]  ;;  %v579_v13 = vld [vmem:[%s1069_s12 + $0x8] sm:$0xff] }
   0x7   :  { %v301_v8 = vld [vmem:[%s1060_s3] sm:$0xff]  ;;  %v55_v11 = vadd.s32 128, %v963_v10  ;;  %v302_v14 = vld [vmem:[%s1060_s3 + $0x8] sm:$0xff]  ;;  %v150_v21 = vadd.s32 2, %v963_v10  ;;  %v129_v24 = vadd.s32 1, %v963_v10  ;;  %vm147_vm0 = vcmp.lt.s32.totalorder %v963_v10, 126 }
   0x8   :  { %v317_v12 = vld [vmem:[%s1061_s4] sm:$0xff]  ;;  %v475_v19 = vld [vmem:[%s1064_s7 + $0x8] sm:$0xff]  ;;  %vm126_vm3 = vcmp.lt.s32.totalorder %v963_v10, 127  ;;  %v108_v30 = vadd.s32 4294967295, %v963_v10  ;;  %v87_v35 = vadd.s32 4294967294, %v963_v10  ;;  %vm105_vm6 = vcmp.lt.s32.totalorder %v963_v10, 1 }
   0x9   :  { %v67_v15 = vand.u32 127, %v55_v11  ;;  %v728_v20 = vld [vmem:[%s1071_s14] sm:$0xff]  ;;  %v318_v23 = vld [vmem:[%s1061_s4 + $0x8] sm:$0xff]  ;;  %vm154_vm1 = vcmp.lt.s32.totalorder %v150_v21, 128  ;;  %vm133_vm4 = vcmp.lt.s32.totalorder %v129_v24, 128  ;;  %vm84_vm9 = vcmp.lt.s32.totalorder %v963_v10, 2 }
   0xa   :  { %124 = vrot.lane.b32.xlu1 %v938_v2, %s839_s20  ;;  %145 = vrot.lane.b32.xlu0 %v938_v2, %s840_s21  ;;  %v490_v32 = vld [vmem:[%s1065_s8] sm:$0xff]  ;;  %v336_v38 = vld [vmem:[%s1063_s6 + $0x8] sm:$0xff]  ;;  %vm110_vm7 = vcmp.ge.s32.totalorder %v108_v30, 0  ;;  %vm89_vm10 = vcmp.ge.s32.totalorder %v87_v35, 0  ;;  %s845_s20 = smov 256   ;;  %s846_s21 = smov 16  }
   0xb   :  { %v151_v22 = vadd.s32 2, %v67_v15  ;;  %v130_v25 = vadd.s32 1, %v67_v15  ;;  %v109_v31 = vadd.s32 4294967295, %v67_v15  ;;  %v88_v36 = vadd.s32 4294967294, %v67_v15  ;;  %v164_v43 = vld [vmem:[%s1058_s1] sm:$0xff]  ;;  %v491_v47 = vld [vmem:[%s1065_s8 + $0x8] sm:$0xff] }
   0xc   :  { %103 = vrot.lane.b32.xlu2 %v938_v2, %s841_s22  ;;  %v578_v46 = vld [vmem:[%s1069_s12] sm:$0xff]  ;;  %v165_v48 = vld [vmem:[%s1058_s1 + $0x8] sm:$0xff] }
   0xd   :  { %vm155_vm2 = vcmp.lt.s32.totalorder %v151_v22, 128  ;;  %vm134_vm5 = vcmp.lt.s32.totalorder %v130_v25, 128  ;;  %vm111_vm8 = vcmp.ge.s32.totalorder %v109_v31, 0  ;;  %vm90_vm11 = vcmp.ge.s32.totalorder %v88_v36, 0  ;;  %v713_v49 = vld [vmem:[%s1070_s13 + $0x8] sm:$0xff]  ;;  %v508_v50 = vld [vmem:[%s1067_s10] sm:$0xff] }
   0xe   :  { %v712_v51 = vld [vmem:[%s1070_s13] sm:$0xff]  ;;  %v729_v52 = vld [vmem:[%s1071_s14 + $0x8] sm:$0xff] }
  0x12   :  { %82 = vrot.lane.b32.xlu1 %v938_v2, %s843_s25  ;;  %80 = vrot.lane.b32.xlu0 %v930_v0, %s843_s25 }
  0x14   :  { %170 = vperm.xlu2 %798, %v166_v5  }
  0x1a   :  { %175 = vperm.xlu0 %799, %v167_v3   ;;  %310 = vperm.xlu1 %800, %v302_v14  }
  0x1c   :  { %305 = vperm.xlu2 %798, %v301_v8  }
  0x22   :  { %339 = vperm.xlu0 %799, %v335_v4   ;;  %326 = vperm.xlu1 %800, %v318_v23  }
  0x24   :  { %321 = vperm.xlu2 %798, %v317_v12  }
  0x2a   :  { %478 = vperm.xlu0 %799, %v474_v6   ;;  %344 = vperm.xlu1 %800, %v336_v38  }
  0x2c   :  { %483 = vperm.xlu2 %798, %v475_v19  }
  0x32   :  { %517 = vperm.xlu0 %799, %v509_v9   ;;  %499 = vperm.xlu1 %800, %v491_v47  }
  0x34   :  { %494 = vperm.xlu2 %798, %v490_v32  }
  0x3a   :  { %587 = vperm.xlu0 %799, %v579_v13   ;;  %512 = vperm.xlu1 %800, %v508_v50  }
  0x3c   :  { %582 = vperm.xlu2 %798, %v578_v46  }
  0x42   :  { %732 = vperm.xlu0 %799, %v728_v20   ;;  %716 = vperm.xlu1 %800, %v712_v51  }
  0x44   :  { %721 = vperm.xlu2 %798, %v713_v49  }
  0x4a   :  { %737 = vperm.xlu1 %800, %v729_v52  }
  0x5e   :  { %v102_v18 = vpop.permute.xlu2 %101 }
  0x66   :  { %v104_v37 = vpop.permute.xlu2 %103 }
  0x67   :  { %v107_v39 = vsel %vm105_vm6, %v104_v37, %v102_v18  ;;  %v106_v40 = vsel %vm105_vm6, %v102_v18, %v104_v37 }
  0x6e   :  { %v171_v55 = vpop.permute.xlu2 %170 }
  0x74   :  { %v123_v16 = vpop.permute.xlu1 %122  ;;  %v144_v17 = vpop.permute.xlu0 %143 }
  0x7c   :  { %v125_v26 = vpop.permute.xlu1 %124  ;;  %v146_v27 = vpop.permute.xlu0 %145 }
  0x7d   :  { %v148_v28 = vsel %vm147_vm0, %v144_v17, %v146_v27  ;;  %v149_v29 = vsel %vm147_vm0, %v146_v27, %v144_v17  ;;  %v127_v33 = vsel %vm126_vm3, %v123_v16, %v125_v26  ;;  %v128_v34 = vsel %vm126_vm3, %v125_v26, %v123_v16 }
  0x7e   :  { %766 = vmatpush.msk.msra.mxu0 %vm154_vm1, %v148_v28  ;;  %772 = vmatpush.msk.msra.mxu1 %vm155_vm2, %v149_v29  ;;  %vm347_vm3 = vcmask 130048  }
  0x80   :  { %767 = vmatpush.msk.msra.mxu0 %vm133_vm4, %v127_v33  ;;  %773 = vmatpush.msk.msra.mxu1 %vm134_vm5, %v128_v34 }
  0x82   :  { %198 = vmatpush.msra.mxu0 %v930_v0  ;;  %221 = vmatpush.msra.mxu1 %v938_v2 }
  0x84   :  { %v83_v41 = vpop.permute.xlu1 %82  ;;  %768 = vmatpush.msk.msra.mxu0 %vm110_vm7, %v107_v39  ;;  %774 = vmatpush.msk.msra.mxu1 %vm111_vm8, %v106_v40  ;;  %v81_v42 = vpop.permute.xlu0 %80 }
  0x85   :  { %v86_v44 = vsel %vm84_vm9, %v83_v41, %v81_v42  ;;  %v85_v45 = vsel %vm84_vm9, %v81_v42, %v83_v41 }
  0x86   :  { %769 = vmatpush.msk.msra.mxu0 %vm89_vm10, %v86_v44  ;;  %775 = vmatpush.msk.msra.mxu1 %vm90_vm11, %v85_v45 }
  0x87   :  { %770 = vmatmul.msk.f32.vlgmr.msra.gmra.mxu0 %vm178_vm12, %v164_v43  ;;  %776 = vmatmul.msk.f32.vlgmr.msra.gmra.mxu1 %vm178_vm12, %v164_v43 }
  0x8c   :  { %v176_v56 = vpop.permute.xlu0 %175  ;;  %v311_v51 = vpop.permute.xlu1 %310 }
  0x8f   :  { %771 = vmatmul.msk.f32.gmra.mxu0 %vm178_vm12, %v165_v48  ;;  %777 = vmatmul.msk.f32.gmra.mxu1 %vm178_vm12, %v165_v48 }
 0x104   :  { %v202_v53 = vpop.f32.mrf.mxu0  ;;  %v225_v54 = vpop.f32.mrf.mxu1 }
 0x105   :  { %v203_v57 = vadd.f32 %v202_v53, %v171_v55  ;;  %v226_v58 = vadd.f32 %v225_v54, %v171_v55  ;;  %v306_v54 = vpop.permute.xlu2 %305 }
 0x107   :  { %v231_v63 = vmax.f32 %v203_v57, 0.0  ;;  %v232_v0 = vmax.f32 %v226_v58, 0.0 }
 0x10c   :  { %v205_v59 = vpop.f32.mrf.mxu0  ;;  %v228_v60 = vpop.f32.mrf.mxu1 }
 0x10d   :  { %v206_v61 = vadd.f32 %v205_v59, %v176_v56  ;;  %v229_v62 = vadd.f32 %v228_v60, %v176_v56 }
 0x10f   :  { %v233_v1 = vmax.f32 %v206_v61, 0.0  ;;  %v234_v2 = vmax.f32 %v229_v62, 0.0 }
 0x111   :  { %v235_v3 = vadd.f32 %v233_v1, %v231_v63  ;;  %v242_v4 = vadd.f32 %v234_v2, %v232_v0 }
 0x113   :  { %v236_v5 = vrot.slane %v235_v3, 4  ;;  %v243_v6 = vrot.slane %v242_v4, 4 }
 0x115   :  { %v237_v7 = vadd.f32 %v236_v5, %v235_v3  ;;  %v244_v8 = vadd.f32 %v243_v6, %v242_v4  ;;  %v327_v4 = vpop.permute.xlu1 %326 }
 0x117   :  { %v238_v9 = vrot.slane %v237_v7, 2  ;;  %v245_v10 = vrot.slane %v244_v8, 2 }
 0x119   :  { %v239_v11 = vadd.f32 %v238_v9, %v237_v7  ;;  %v246_v12 = vadd.f32 %v245_v10, %v244_v8  ;;  %v322_v7 = vpop.permute.xlu2 %321  ;;  %v333_v10 = vld [vmem:[%s1062_s5] sm:$0xff] }
 0x11b   :  { %v240_v13 = vrot.slane %v239_v11, 1  ;;  %v247_v14 = vrot.slane %v246_v12, 1 }
 0x11d   :  { %v241_v15 = vadd.f32 %v240_v13, %v239_v11  ;;  %v248_v16 = vadd.f32 %v247_v14, %v246_v12  ;;  %v334_v12 = vld [vmem:[%s1062_s5 + $0x8] sm:$0xff] }
 0x11f   :  { %v249_v17 = vmul.f32 0.0625, %v241_v15  ;;  %v250_v18 = vmul.f32 0.0625, %v248_v16  ;;  %v340_v15 = vpop.permute.xlu0 %339 }
 0x121   :  { %v251_v19 = vsub.f32 %v231_v63, %v249_v17  ;;  %v253_v20 = vsub.f32 %v233_v1, %v249_v17  ;;  %v252_v21 = vsub.f32 %v232_v0, %v250_v18  ;;  %v254_v22 = vsub.f32 %v234_v2, %v250_v18  ;;  %v345_v18 = vpop.permute.xlu1 %344 }
 0x123   :  { %v255_v23 = vmul.f32 %v251_v19, %v251_v19  ;;  %v257_v24 = vmul.f32 %v253_v20, %v253_v20  ;;  %v256_v25 = vmul.f32 %v252_v21, %v252_v21  ;;  %v258_v26 = vmul.f32 %v254_v22, %v254_v22 }
 0x125   :  { %v259_v27 = vadd.f32 %v257_v24, %v255_v23  ;;  %v266_v28 = vadd.f32 %v258_v26, %v256_v25 }
 0x127   :  { %v260_v29 = vrot.slane %v259_v27, 4  ;;  %v267_v30 = vrot.slane %v266_v28, 4 }
 0x129   :  { %v261_v31 = vadd.f32 %v260_v29, %v259_v27  ;;  %v268_v32 = vadd.f32 %v267_v30, %v266_v28 }
 0x12b   :  { %v262_v33 = vrot.slane %v261_v31, 2  ;;  %v269_v34 = vrot.slane %v268_v32, 2 }
 0x12d   :  { %v263_v35 = vadd.f32 %v262_v33, %v261_v31  ;;  %v270_v36 = vadd.f32 %v269_v34, %v268_v32 }
 0x12f   :  { %v264_v37 = vrot.slane %v263_v35, 1  ;;  %v271_v38 = vrot.slane %v270_v36, 1 }
 0x131   :  { %v265_v39 = vadd.f32 %v264_v37, %v263_v35  ;;  %v272_v40 = vadd.f32 %v271_v38, %v270_v36 }
 0x133   :  { %v273_v41 = vmul.f32 0.0625, %v265_v39  ;;  %v274_v42 = vmul.f32 0.0625, %v272_v40 }
 0x135   :  { %v275_v43 = vadd.f32 1e-05, %v273_v41  ;;  %v276_v44 = vadd.f32 1e-05, %v274_v42 }
 0x137   :  { %801 = vrsqrt.f32 %v275_v43  ;;  %vm283_vm15 = vweird.f32 %v275_v43  ;;  %vm293_vm1 = vweird.f32 %v276_v44 }
 0x138   :  { %803 = vrsqrt.f32 %v276_v44 }
 0x13d   :  { %v802_v45 = vpop.eup %801 }
 0x13e   :  { %v804_v46 = vpop.eup %803  ;;  %v278_v47 = vmul.f32 %v802_v45, %v275_v43  ;;  %vm284_vm13 = vweird.f32 %v802_v45 }
 0x13f   :  { %v288_v48 = vmul.f32 %v804_v46, %v276_v44  ;;  %vm294_vm14 = vweird.f32 %v804_v46  ;;  %vm285_vm0 = vmor %vm283_vm15, %vm284_vm13 }
 0x140   :  { %v279_v49 = vmul.f32 %v802_v45, %v278_v47  ;;  %vm295_vm2 = vmor %vm293_vm1, %vm294_vm14 }
 0x141   :  { %v289_v50 = vmul.f32 %v804_v46, %v288_v48 }
 0x142   :  { %v280_v52 = vmul.f32 0.5, %v279_v49 }
 0x143   :  { %v290_v53 = vmul.f32 0.5, %v289_v50 }
 0x144   :  { %v281_v55 = vsub.f32 1.5, %v280_v52 }
 0x145   :  { %v291_v56 = vsub.f32 1.5, %v290_v53 }
 0x146   :  { %v282_v57 = vmul.f32 %v802_v45, %v281_v55 }
 0x147   :  { %v292_v58 = vmul.f32 %v804_v46, %v291_v56 }
 0x148   :  { %v286_v59 = vsel %vm285_vm0, %v802_v45, %v282_v57 }
 0x149   :  { %v296_v60 = vsel %vm295_vm2, %v804_v46, %v292_v58  ;;  %v299_v61 = vmul.f32 %v286_v59, %v253_v20  ;;  %v297_v62 = vmul.f32 %v286_v59, %v251_v19 }
 0x14a   :  { %v300_v63 = vmul.f32 %v296_v60, %v254_v22  ;;  %v298_v0 = vmul.f32 %v296_v60, %v252_v21 }
 0x14b   :  { %v315_v1 = vmul.f32 %v311_v51, %v299_v61  ;;  %v313_v2 = vmul.f32 %v306_v54, %v297_v62 }
 0x14c   :  { %v316_v3 = vmul.f32 %v311_v51, %v300_v63  ;;  %v314_v5 = vmul.f32 %v306_v54, %v298_v0 }
 0x14d   :  { %v331_v6 = vadd.f32 %v327_v4, %v315_v1  ;;  %v329_v9 = vadd.f32 %v322_v7, %v313_v2 }
 0x14e   :  { %v332_v8 = vadd.f32 %v327_v4, %v316_v3  ;;  %v330_v11 = vadd.f32 %v322_v7, %v314_v5 }
 0x14f   :  { %368 = vmatpush.msra.mxu2 %v331_v6 }
 0x150   :  { %391 = vmatpush.msra.mxu3 %v332_v8 }
 0x151   :  { %369 = vmatpush.msra.mxu2 %v329_v9 }
 0x152   :  { %392 = vmatpush.msra.mxu3 %v330_v11  ;;  %778 = vmatmul.msk.f32.vlgmr.msra.gmra.mxu2 %vm347_vm3, %v333_v10 }
 0x153   :  { %780 = vmatmul.msk.f32.vlgmr.msra.gmra.mxu3 %vm347_vm3, %v333_v10 }
 0x15a   :  { %779 = vmatmul.msk.f32.gmra.mxu2 %vm347_vm3, %v334_v12 }
 0x15b   :  { %781 = vmatmul.msk.f32.gmra.mxu3 %vm347_vm3, %v334_v12 }
 0x1d5   :  { %v371_v13 = vpop.f32.mrf.mxu2 }
 0x1d6   :  { %v394_v14 = vpop.f32.mrf.mxu3  ;;  %v372_v16 = vadd.f32 %v371_v13, %v340_v15 }
 0x1d7   :  { %v395_v17 = vadd.f32 %v394_v14, %v340_v15 }
 0x1d8   :  { %v400_v20 = vmax.f32 %v372_v16, 0.0 }
 0x1d9   :  { %v401_v23 = vmax.f32 %v395_v17, 0.0  ;;  %v484_v17 = vpop.permute.xlu2 %483 }
 0x1da   :  { %v404_v27 = vadd.f32 %v400_v20, %v329_v9 }
 0x1db   :  { %v405_v29 = vadd.f32 %v401_v23, %v330_v11 }
 0x1dd   :  { %v374_v19 = vpop.f32.mrf.mxu2 }
 0x1de   :  { %v375_v21 = vadd.f32 %v374_v19, %v345_v18  ;;  %v397_v22 = vpop.f32.mrf.mxu3 }
 0x1df   :  { %v398_v24 = vadd.f32 %v397_v22, %v345_v18 }
 0x1e0   :  { %v402_v25 = vmax.f32 %v375_v21, 0.0 }
 0x1e1   :  { %v403_v26 = vmax.f32 %v398_v24, 0.0 }
 0x1e2   :  { %v406_v28 = vadd.f32 %v402_v25, %v331_v6 }
 0x1e3   :  { %v407_v30 = vadd.f32 %v403_v26, %v332_v8  ;;  %v479_v26 = vpop.permute.xlu0 %478 }
 0x1e4   :  { %v408_v31 = vadd.f32 %v406_v28, %v404_v27 }
 0x1e5   :  { %v415_v32 = vadd.f32 %v407_v30, %v405_v29 }
 0x1e6   :  { %v409_v33 = vrot.slane %v408_v31, 4 }
 0x1e7   :  { %v416_v34 = vrot.slane %v415_v32, 4 }
 0x1e8   :  { %v410_v35 = vadd.f32 %v409_v33, %v408_v31  ;;  %v500_v31 = vpop.permute.xlu1 %499 }
 0x1e9   :  { %v417_v36 = vadd.f32 %v416_v34, %v415_v32 }
 0x1ea   :  { %v411_v37 = vrot.slane %v410_v35, 2 }
 0x1eb   :  { %v418_v38 = vrot.slane %v417_v36, 2 }
 0x1ec   :  { %v412_v39 = vadd.f32 %v411_v37, %v410_v35  ;;  %v495_v35 = vpop.permute.xlu2 %494 }
 0x1ed   :  { %v419_v40 = vadd.f32 %v418_v38, %v417_v36  ;;  %v506_v38 = vld [vmem:[%s1066_s9] sm:$0xff] }
 0x1ee   :  { %v413_v41 = vrot.slane %v412_v39, 1 }
 0x1ef   :  { %v420_v42 = vrot.slane %v419_v40, 1 }
 0x1f0   :  { %v414_v43 = vadd.f32 %v413_v41, %v412_v39 }
 0x1f1   :  { %v421_v44 = vadd.f32 %v420_v42, %v419_v40  ;;  %v507_v40 = vld [vmem:[%s1066_s9 + $0x8] sm:$0xff] }
 0x1f2   :  { %v422_v45 = vmul.f32 0.0625, %v414_v43  ;;  %v518_v43 = vpop.permute.xlu0 %517 }
 0x1f3   :  { %v423_v46 = vmul.f32 0.0625, %v421_v44  ;;  %v513_v44 = vpop.permute.xlu1 %512 }
 0x1f4   :  { %v424_v47 = vsub.f32 %v404_v27, %v422_v45  ;;  %v426_v48 = vsub.f32 %v406_v28, %v422_v45 }
 0x1f5   :  { %v425_v49 = vsub.f32 %v405_v29, %v423_v46  ;;  %v427_v50 = vsub.f32 %v407_v30, %v423_v46 }
 0x1f6   :  { %v428_v51 = vmul.f32 %v424_v47, %v424_v47  ;;  %v430_v52 = vmul.f32 %v426_v48, %v426_v48 }
 0x1f7   :  { %v429_v53 = vmul.f32 %v425_v49, %v425_v49  ;;  %v431_v54 = vmul.f32 %v427_v50, %v427_v50 }
 0x1f8   :  { %v432_v55 = vadd.f32 %v430_v52, %v428_v51 }
 0x1f9   :  { %v439_v56 = vadd.f32 %v431_v54, %v429_v53  ;;  %v576_v54 = vld [vmem:[%s1068_s11] sm:$0xff] }
 0x1fa   :  { %v433_v57 = vrot.slane %v432_v55, 4 }
 0x1fb   :  { %v440_v58 = vrot.slane %v439_v56, 4 }
 0x1fc   :  { %v434_v59 = vadd.f32 %v433_v57, %v432_v55 }
 0x1fd   :  { %v441_v60 = vadd.f32 %v440_v58, %v439_v56  ;;  %v577_v56 = vld [vmem:[%s1068_s11 + $0x8] sm:$0xff]  ;;  %s844_s11 = smov [#allocation2]  }
 0x1fe   :  { %v435_v61 = vrot.slane %v434_v59, 2  ;;  %s752_s17 = sshll.u32 %s844_s11, 4  ;;  %s753_s17 = int_to_ptr.vmem [resolvable:$true] %s752_s17 }
 0x1ff   :  { %v442_v62 = vrot.slane %v441_v60, 2 }
 0x200   :  { %v436_v63 = vadd.f32 %v435_v61, %v434_v59  ;;  %v583_v59 = vpop.permute.xlu2 %582  ;;  %v588_v61 = vpop.permute.xlu0 %587 }
 0x201   :  { %v443_v0 = vadd.f32 %v442_v62, %v441_v60 }
 0x202   :  { %v437_v1 = vrot.slane %v436_v63, 1 }
 0x203   :  { %v444_v2 = vrot.slane %v443_v0, 1 }
 0x204   :  { %v438_v3 = vadd.f32 %v437_v1, %v436_v63 }
 0x205   :  { %v445_v4 = vadd.f32 %v444_v2, %v443_v0 }
 0x206   :  { %v446_v5 = vmul.f32 0.0625, %v438_v3 }
 0x207   :  { %v447_v6 = vmul.f32 0.0625, %v445_v4 }
 0x208   :  { %v448_v7 = vadd.f32 1e-05, %v446_v5 }
 0x209   :  { %v449_v8 = vadd.f32 1e-05, %v447_v6 }
 0x20a   :  { %805 = vrsqrt.f32 %v448_v7  ;;  %vm456_vm6 = vweird.f32 %v448_v7 }
 0x20b   :  { %807 = vrsqrt.f32 %v449_v8  ;;  %vm466_vm8 = vweird.f32 %v449_v8 }
 0x210   :  { %v806_v9 = vpop.eup %805 }
 0x211   :  { %v808_v10 = vpop.eup %807  ;;  %v451_v11 = vmul.f32 %v806_v9, %v448_v7  ;;  %vm457_vm4 = vweird.f32 %v806_v9 }
 0x212   :  { %v461_v12 = vmul.f32 %v808_v10, %v449_v8  ;;  %vm467_vm5 = vweird.f32 %v808_v10  ;;  %vm458_vm7 = vmor %vm456_vm6, %vm457_vm4 }
 0x213   :  { %v452_v13 = vmul.f32 %v806_v9, %v451_v11  ;;  %vm468_vm9 = vmor %vm466_vm8, %vm467_vm5 }
 0x214   :  { %v462_v14 = vmul.f32 %v808_v10, %v461_v12 }
 0x215   :  { %v453_v15 = vmul.f32 0.5, %v452_v13 }
 0x216   :  { %v463_v16 = vmul.f32 0.5, %v462_v14 }
 0x217   :  { %v454_v18 = vsub.f32 1.5, %v453_v15 }
 0x218   :  { %v464_v19 = vsub.f32 1.5, %v463_v16 }
 0x219   :  { %v455_v20 = vmul.f32 %v806_v9, %v454_v18 }
 0x21a   :  { %v465_v21 = vmul.f32 %v808_v10, %v464_v19 }
 0x21b   :  { %v459_v22 = vsel %vm458_vm7, %v806_v9, %v455_v20 }
 0x21c   :  { %v472_v23 = vmul.f32 %v459_v22, %v426_v48  ;;  %v469_v24 = vsel %vm468_vm9, %v808_v10, %v465_v21  ;;  %v470_v25 = vmul.f32 %v459_v22, %v424_v47 }
 0x21d   :  { %v473_v27 = vmul.f32 %v469_v24, %v427_v50  ;;  %v471_v28 = vmul.f32 %v469_v24, %v425_v49 }
 0x21e   :  { %v488_v29 = vmul.f32 %v484_v17, %v472_v23  ;;  %v486_v30 = vmul.f32 %v479_v26, %v470_v25 }
 0x21f   :  { %v489_v32 = vmul.f32 %v484_v17, %v473_v27  ;;  %v487_v33 = vmul.f32 %v479_v26, %v471_v28 }
 0x220   :  { %v504_v34 = vadd.f32 %v500_v31, %v488_v29  ;;  %v502_v37 = vadd.f32 %v495_v35, %v486_v30 }
 0x221   :  { %v505_v36 = vadd.f32 %v500_v31, %v489_v32  ;;  %v503_v39 = vadd.f32 %v495_v35, %v487_v33 }
 0x222   :  { %540 = vmatpush.msrb.mxu2 %v504_v34 }
 0x223   :  { %563 = vmatpush.msrb.mxu3 %v505_v36 }
 0x224   :  { %541 = vmatpush.msrb.mxu2 %v502_v37 }
 0x225   :  { %564 = vmatpush.msrb.mxu3 %v503_v39  ;;  %782 = vmatmul.msk.f32.vlgmr.msrb.gmra.mxu2 %vm347_vm3, %v506_v38 }
 0x226   :  { %784 = vmatmul.msk.f32.vlgmr.msrb.gmra.mxu3 %vm347_vm3, %v506_v38 }
 0x22d   :  { %783 = vmatmul.msk.f32.gmra.mxu2 %vm347_vm3, %v507_v40 }
 0x22e   :  { %785 = vmatmul.msk.f32.gmra.mxu3 %vm347_vm3, %v507_v40 }
 0x2a8   :  { %v543_v41 = vpop.f32.mrf.mxu2 }
 0x2a9   :  { %v566_v42 = vpop.f32.mrf.mxu3  ;;  %v544_v46 = vadd.f32 %v543_v41, %v513_v44 }
 0x2aa   :  { %v567_v49 = vadd.f32 %v566_v42, %v513_v44 }
 0x2ab   :  { %v572_v53 = vmax.f32 %v544_v46, 0.0 }
 0x2ac   :  { %v573_v55 = vmax.f32 %v567_v49, 0.0 }
 0x2b0   :  { %v546_v45 = vpop.f32.mrf.mxu2 }
 0x2b1   :  { %v547_v47 = vadd.f32 %v546_v45, %v518_v43  ;;  %v569_v48 = vpop.f32.mrf.mxu3 }
 0x2b2   :  { %v570_v50 = vadd.f32 %v569_v48, %v518_v43 }
 0x2b3   :  { %v574_v51 = vmax.f32 %v547_v47, 0.0 }
 0x2b4   :  { %v575_v52 = vmax.f32 %v570_v50, 0.0 }
 0x2b5   :  { %610 = vmatpush.msrb.mxu0 %v574_v51 }
 0x2b6   :  { %633 = vmatpush.msrb.mxu1 %v575_v52 }
 0x2b7   :  { %611 = vmatpush.msrb.mxu0 %v572_v53 }
 0x2b8   :  { %634 = vmatpush.msrb.mxu1 %v573_v55  ;;  %786 = vmatmul.msk.f32.vlgmr.msrb.gmra.mxu0 %vm347_vm3, %v576_v54  ;;  %v717_v55 = vpop.permute.xlu1 %716 }
 0x2b9   :  { %788 = vmatmul.msk.f32.vlgmr.msrb.gmra.mxu1 %vm347_vm3, %v576_v54 }
 0x2c0   :  { %787 = vmatmul.msk.f32.gmra.mxu0 %vm347_vm3, %v577_v56 }
 0x2c1   :  { %789 = vmatmul.msk.f32.gmra.mxu1 %vm347_vm3, %v577_v56 }
 0x335   :  { %v613_v57 = vpop.f32.mrf.mxu0 }
 0x336   :  { %v636_v58 = vpop.f32.mrf.mxu1  ;;  %v614_v60 = vadd.f32 %v613_v57, %v583_v59 }
 0x337   :  { %v637_v62 = vadd.f32 %v636_v58, %v583_v59 }
 0x338   :  { %v642_v3 = vadd.f32 %v614_v60, %v502_v37 }
 0x339   :  { %v643_v5 = vadd.f32 %v637_v62, %v503_v39 }
 0x33d   :  { %v616_v63 = vpop.f32.mrf.mxu0 }
 0x33e   :  { %v617_v0 = vadd.f32 %v616_v63, %v588_v61  ;;  %v639_v1 = vpop.f32.mrf.mxu1 }
 0x33f   :  { %v640_v2 = vadd.f32 %v639_v1, %v588_v61 }
 0x340   :  { %v644_v4 = vadd.f32 %v617_v0, %v504_v34 }
 0x341   :  { %v645_v6 = vadd.f32 %v640_v2, %v505_v36  ;;  %v722_v2 = vpop.permute.xlu2 %721 }
 0x342   :  { %v646_v7 = vadd.f32 %v644_v4, %v642_v3 }
 0x343   :  { %v653_v8 = vadd.f32 %v645_v6, %v643_v5 }
 0x344   :  { %v647_v9 = vrot.slane %v646_v7, 4 }
 0x345   :  { %v654_v10 = vrot.slane %v653_v8, 4 }
 0x346   :  { %v648_v11 = vadd.f32 %v647_v9, %v646_v7  ;;  %v733_v7 = vpop.permute.xlu0 %732 }
 0x347   :  { %v655_v12 = vadd.f32 %v654_v10, %v653_v8  ;;  %v738_v8 = vpop.permute.xlu1 %737 }
 0x348   :  { %v649_v13 = vrot.slane %v648_v11, 2 }
 0x349   :  { %v656_v14 = vrot.slane %v655_v12, 2 }
 0x34a   :  { %v650_v15 = vadd.f32 %v649_v13, %v648_v11 }
 0x34b   :  { %v657_v16 = vadd.f32 %v656_v14, %v655_v12 }
 0x34c   :  { %v651_v17 = vrot.slane %v650_v15, 1 }
 0x34d   :  { %v658_v18 = vrot.slane %v657_v16, 1 }
 0x34e   :  { %v652_v19 = vadd.f32 %v651_v17, %v650_v15 }
 0x34f   :  { %v659_v20 = vadd.f32 %v658_v18, %v657_v16 }
 0x350   :  { %v660_v21 = vmul.f32 0.0625, %v652_v19 }
 0x351   :  { %v661_v22 = vmul.f32 0.0625, %v659_v20 }
 0x352   :  { %v662_v23 = vsub.f32 %v642_v3, %v660_v21  ;;  %v664_v24 = vsub.f32 %v644_v4, %v660_v21 }
 0x353   :  { %v663_v25 = vsub.f32 %v643_v5, %v661_v22  ;;  %v665_v26 = vsub.f32 %v645_v6, %v661_v22 }
 0x354   :  { %v666_v27 = vmul.f32 %v662_v23, %v662_v23  ;;  %v668_v28 = vmul.f32 %v664_v24, %v664_v24 }
 0x355   :  { %v667_v29 = vmul.f32 %v663_v25, %v663_v25  ;;  %v669_v30 = vmul.f32 %v665_v26, %v665_v26 }
 0x356   :  { %v670_v31 = vadd.f32 %v668_v28, %v666_v27 }
 0x357   :  { %v677_v32 = vadd.f32 %v669_v30, %v667_v29 }
 0x358   :  { %v671_v33 = vrot.slane %v670_v31, 4 }
 0x359   :  { %v678_v34 = vrot.slane %v677_v32, 4 }
 0x35a   :  { %v672_v35 = vadd.f32 %v671_v33, %v670_v31 }
 0x35b   :  { %v679_v36 = vadd.f32 %v678_v34, %v677_v32 }
 0x35c   :  { %v673_v37 = vrot.slane %v672_v35, 2 }
 0x35d   :  { %v680_v38 = vrot.slane %v679_v36, 2 }
 0x35e   :  { %v674_v39 = vadd.f32 %v673_v37, %v672_v35 }
 0x35f   :  { %v681_v40 = vadd.f32 %v680_v38, %v679_v36 }
 0x360   :  { %v675_v41 = vrot.slane %v674_v39, 1 }
 0x361   :  { %v682_v42 = vrot.slane %v681_v40, 1 }
 0x362   :  { %v676_v43 = vadd.f32 %v675_v41, %v674_v39 }
 0x363   :  { %v683_v44 = vadd.f32 %v682_v42, %v681_v40 }
 0x364   :  { %v684_v45 = vmul.f32 0.0625, %v676_v43 }
 0x365   :  { %v685_v46 = vmul.f32 0.0625, %v683_v44 }
 0x366   :  { %v686_v47 = vadd.f32 1e-05, %v684_v45 }
 0x367   :  { %v687_v48 = vadd.f32 1e-05, %v685_v46 }
 0x368   :  { %809 = vrsqrt.f32 %v686_v47  ;;  %vm694_vm12 = vweird.f32 %v686_v47 }
 0x369   :  { %811 = vrsqrt.f32 %v687_v48  ;;  %vm704_vm14 = vweird.f32 %v687_v48 }
 0x36e   :  { %v810_v49 = vpop.eup %809 }
 0x36f   :  { %v812_v50 = vpop.eup %811  ;;  %v689_v51 = vmul.f32 %v810_v49, %v686_v47  ;;  %vm695_vm10 = vweird.f32 %v810_v49 }
 0x370   :  { %v699_v52 = vmul.f32 %v812_v50, %v687_v48  ;;  %vm705_vm11 = vweird.f32 %v812_v50  ;;  %vm696_vm13 = vmor %vm694_vm12, %vm695_vm10 }
 0x371   :  { %v690_v53 = vmul.f32 %v810_v49, %v689_v51  ;;  %vm706_vm15 = vmor %vm704_vm14, %vm705_vm11 }
 0x372   :  { %v700_v54 = vmul.f32 %v812_v50, %v699_v52 }
 0x373   :  { %v691_v56 = vmul.f32 0.5, %v690_v53 }
 0x374   :  { %v701_v57 = vmul.f32 0.5, %v700_v54 }
 0x375   :  { %v692_v58 = vsub.f32 1.5, %v691_v56 }
 0x376   :  { %v702_v59 = vsub.f32 1.5, %v701_v57 }
 0x377   :  { %v693_v60 = vmul.f32 %v810_v49, %v692_v58 }
 0x378   :  { %v703_v61 = vmul.f32 %v812_v50, %v702_v59 }
 0x379   :  { %v697_v62 = vsel %vm696_vm13, %v810_v49, %v693_v60 }
 0x37a   :  { %v708_v63 = vmul.f32 %v697_v62, %v662_v23  ;;  %v710_v0 = vmul.f32 %v697_v62, %v664_v24  ;;  %v707_v1 = vsel %vm706_vm15, %v812_v50, %v703_v61 }
 0x37b   :  { %v709_v3 = vmul.f32 %v707_v1, %v663_v25  ;;  %v711_v4 = vmul.f32 %v707_v1, %v665_v26 }
 0x37c   :  { %v724_v5 = vmul.f32 %v717_v55, %v708_v63  ;;  %v726_v6 = vmul.f32 %v722_v2, %v710_v0 }
 0x37d   :  { %v725_v9 = vmul.f32 %v717_v55, %v709_v3  ;;  %v727_v10 = vmul.f32 %v722_v2, %v711_v4 }
 0x37e   :  { %v740_v11 = vadd.f32 %v733_v7, %v724_v5  ;;  %v742_v12 = vadd.f32 %v738_v8, %v726_v6 }
 0x37f   :  { %v741_v13 = vadd.f32 %v733_v7, %v725_v9  ;;  %v743_v14 = vadd.f32 %v738_v8, %v727_v10 }
 0x380   :  { %744 = vst [vmem:[#allocation2] sm:$0xff] %v740_v11 }
 0x381   :  { %746 = vst [vmem:[#allocation2 + $0x10] sm:$0xff] %v742_v12 }
 0x382   :  { %745 = vst [vmem:[#allocation2 + $0x8] sm:$0xff] %v741_v13 }
 0x383   :  { %747 = vst [vmem:[#allocation2 + $0x18] sm:$0xff] %v743_v14 }
 0x384   :  { %760 = dma.vmem_to_hbm [thread:$0]  %s753_s17, 512, %s755_s19, [#allocation3], %s845_s20, %s845_s20, %s846_s21  }
 0x385   :  { %837 = dma.done.wait [#allocation3], 512  }
 0x386   :  { %838 = vsyncadd [#allocation3], 4294966784 }
 0x387   :  { %765 = vsyncpa [#allocation3], 1 }

</bundles_post_ra>
